<compile_context>
chip_gen: v7x
topology: tpu7x:2x2x1
jax: 0.10.0
libtpu: 0.0.40
codegen_flags: <defaults>
</compile_context>

<pallas_src>
import math

import jax
import jax.numpy as jnp
import numpy as np
from jax.experimental import pallas as pl
from jax.experimental.pallas import tpu as pltpu


def _gp_attention_kernel(user_ref, item_ref, wq_ref, bq_ref, wkv_ref, bkv_ref,
                         wd_ref, bd_ref, lnw_ref, lnb_ref, c_ref, out_ref):
    bt, T, H = item_ref.shape
    md = item_ref.dtype                                   # matmul operand dtype (bf16 or f32)

    item = item_ref[...]                                  # (bt, T, H)
    item2 = item.reshape(bt * T, H)                       # leading-dim merge, layout-preserving

    # Fused K|V projection on the MXU: (bt*T, H) @ (H, 2H), f32 accumulation.
    kv = jnp.dot(item2, wkv_ref[...], preferred_element_type=jnp.float32) + bkv_ref[...]
    k = kv[:, :H].reshape(bt, T, H)                       # (bt, T, H) f32
    v = kv[:, H:].reshape(bt, T, H)                       # (bt, T, H) f32

    # Q projection; the 1/sqrt(H) scale is folded into wq / bq by the wrapper.
    q = jnp.dot(user_ref[...], wq_ref[...], preferred_element_type=jnp.float32) + bq_ref[...]

    # attn_score over flattened item positions: s[b, p] = <q[b], k[b, p]>   (already scaled)
    s = jnp.sum(q[:, None, :] * k, axis=-1)               # (bt, T) f32

    # Softmax over gathered scores + gathered-value weighted sum, reformulated with the
    # precomputed C[t, p] = sum_{j : index[t, j] == p} exp(mask[t, j]) so that no (T, T, T)
    # one-hot or in-kernel gather is needed (exactly equivalent to the PyTorch computation).
    m = jnp.max(s, axis=-1, keepdims=True)                # (bt, 1)
    e = jnp.exp(s - m)                                    # (bt, T)  f32, EUP
    w = c_ref[...][None, :, :] * e[:, None, :]            # (bt, T, T)
    z = jnp.sum(w, axis=-1, keepdims=True)                # (bt, T, 1)
    wn = w * pl.reciprocal(z, approx=True)                # normalized weights over positions p

    attn = jnp.einsum("btp,bph->bth", wn.astype(md), v.astype(md),
                      preferred_element_type=jnp.float32)  # (bt, T, H) f32, MXU

    # Dense projection + AddNorm (dropouts are identity in eval mode), eps = 1e-12.
    dense = jnp.dot(attn.reshape(bt * T, H).astype(md), wd_ref[...],
                    preferred_element_type=jnp.float32) + bd_ref[...]
    x = dense + item2.astype(jnp.float32)
    mu = jnp.mean(x, axis=-1, keepdims=True)
    var = jnp.mean((x - mu) ** 2, axis=-1, keepdims=True)
    y = (x - mu) * jax.lax.rsqrt(var + 1e-12) * lnw_ref[...] + lnb_ref[...]

    out_ref[...] = y.reshape(bt, T, H).astype(out_ref.dtype)


def gp_attention_pallas(user_emb, item_emb, mask, index, params, *,
                        block_b=None, matmul_dtype=jnp.bfloat16):
    B, S, L, H = item_emb.shape
    T = S * L
    md = matmul_dtype

    # Batch tile: aim for >= ~256 projection rows (block_b * T) per grid step so the MXU /
    # sublanes are filled and the ~0.35us per-step overhead is amortized.  Keep block_b equal
    # to B or a multiple of 8 so the 2-D user block satisfies the (8, 128) tiling rule.
    if block_b is None:
        target = max(1, pl.cdiv(256, T))
        block_b = B if B <= target else max(8, (target // 8) * 8)
    block_b = max(1, min(block_b, B))
    grid = (pl.cdiv(B, block_b),)

    item_flat = item_emb.reshape(B, T, H).astype(md)
    user2 = user_emb.astype(md)                                         # (B, H)

    scale = 1.0 / math.sqrt(H)                                          # folded into wq / bq
    wq = (params["wq"] * scale).astype(md)
    bq = (params["bq"] * scale).reshape(1, H).astype(jnp.float32)
    wkv = jnp.concatenate([params["wk"], params["wv"]], axis=1).astype(md)          # (H, 2H)
    bkv = jnp.concatenate([params["bk"], params["bv"]], axis=0).reshape(1, 2 * H).astype(jnp.float32)
    wd = params["wd"].astype(md)
    bd = params["bd"].reshape(1, H).astype(jnp.float32)
    lnw = params["lnw"].reshape(1, H).astype(jnp.float32)
    lnb = params["lnb"].reshape(1, H).astype(jnp.float32)

    # C[t, p] = sum_{j : index[t, j] == p} exp(mask[t, j])  — O(T^2) setup (index/mask are
    # static inputs, like the weights); replaces the old O(T^3) one-hot tensor entirely.
    emask = jnp.exp(mask.astype(jnp.float32))
    rows = jnp.broadcast_to(jnp.arange(T, dtype=index.dtype)[:, None], (T, T))
    cmat = jnp.zeros((T, T), jnp.float32).at[rows, index].add(emask)

    def full(shape):
        return pl.BlockSpec(shape, lambda b: (0,) * len(shape))

    in_specs = [
        pl.BlockSpec((block_b, H), lambda b: (b, 0)),        # user_emb
        pl.BlockSpec((block_b, T, H), lambda b: (b, 0, 0)),  # item_emb (flattened)
        full((H, H)), full((1, H)),                          # wq (scaled), bq (scaled)
        full((H, 2 * H)), full((1, 2 * H)),                  # fused wk|wv, bk|bv
        full((H, H)), full((1, H)),                          # wd, bd
        full((1, H)), full((1, H)),                          # LayerNorm weight / bias
        full((T, T)),                                        # C matrix
    ]

    out = pl.pallas_call(
        _gp_attention_kernel,
        out_shape=jax.ShapeDtypeStruct((B, T, H), jnp.float32),
        grid_spec=pltpu.PrefetchScalarGridSpec(
            num_scalar_prefetch=0,
            grid=grid,
            in_specs=in_specs,
            out_specs=pl.BlockSpec((block_b, T, H), lambda b: (b, 0, 0)),
        ),
        compiler_params=pltpu.CompilerParams(
            dimension_semantics=("parallel",),   # independent batch tiles -> both v7x TCs
        ),
    )(user2, item_flat, wq, bq, wkv, bkv, wd, bd, lnw, lnb, cmat)

    return out.reshape(B, S, L, H)


def gp_attention_ref(user_emb, item_emb, mask, index, params):
    """Pure-JAX mirror of the PyTorch forward (eval mode, dropout = identity), all f32."""
    B, S, L, H = item_emb.shape
    T = S * L
    q = user_emb @ params["wq"] + params["bq"]                     # (B, H)
    k = item_emb @ params["wk"] + params["bk"]                     # (B, S, L, H)
    v = item_emb @ params["wv"] + params["bv"]                     # (B, S, L, H)
    s = jnp.einsum("bh,bslh->bsl", q, k) / math.sqrt(H)
    s = s.reshape(B, T)
    s_g = s[:, index] + mask                                       # (B, T, T)
    w = jax.nn.softmax(s_g, axis=-1)                               # (B, T, T)
    v_flat = v.reshape(B, T, H)
    v_g = v_flat[:, index, :]                                      # (B, T, T, H)
    attn = jnp.einsum("btj,btjh->bth", w, v_g)                     # (B, T, H)
    attn = attn.reshape(B, S, L, H)
    dense = attn @ params["wd"] + params["bd"]
    x = dense + item_emb
    mu = x.mean(-1, keepdims=True)
    var = ((x - mu) ** 2).mean(-1, keepdims=True)
    return (x - mu) / jnp.sqrt(var + 1e-12) * params["lnw"] + params["lnb"]


if __name__ == "__main__":
    B, S, L, H = 2, 2, 4, 32          # batch, ses_len, seq_len, hidden_size
    T = S * L

    key = jax.random.PRNGKey(0)
    keys = jax.random.split(key, 12)

    params = {
        "wq": 0.05 * jax.random.normal(keys[0], (H, H), jnp.float32),
        "bq": 0.05 * jax.random.normal(keys[1], (H,), jnp.float32),
        "wk": 0.05 * jax.random.normal(keys[2], (H, H), jnp.float32),
        "bk": 0.05 * jax.random.normal(keys[3], (H,), jnp.float32),
        "wv": 0.05 * jax.random.normal(keys[4], (H, H), jnp.float32),
        "bv": 0.05 * jax.random.normal(keys[5], (H,), jnp.float32),
        "wd": 0.05 * jax.random.normal(keys[6], (H, H), jnp.float32),
        "bd": 0.05 * jax.random.normal(keys[7], (H,), jnp.float32),
        "lnw": 1.0 + 0.1 * jax.random.normal(keys[8], (H,), jnp.float32),
        "lnb": 0.05 * jax.random.normal(keys[9], (H,), jnp.float32),
    }

    user_emb = jax.random.normal(keys[10], (B, H), jnp.float32)
    item_emb = jax.random.normal(keys[11], (B, S, L, H), jnp.float32)

    # Non-trivial gather pattern with duplicate indices per row (exercises the exp(mask)
    # grouping in C) plus a causal-style -1e9 mask and small additive biases on live slots.
    j_ar = np.arange(T)[None, :]
    t_ar = np.arange(T)[:, None]
    idx_np = ((j_ar // 2) + t_ar) % T
    mask_np = np.where(idx_np <= t_ar, -0.1 * (j_ar % 3), -1e9).astype(np.float32)
    index = jnp.asarray(idx_np, dtype=jnp.int32)
    mask = jnp.asarray(mask_np)

    ref = jax.block_until_ready(gp_attention_ref(user_emb, item_emb, mask, index, params))

    # f32 MXU path: checks the gather/softmax reformulation against the faithful reference
    # (tolerance covers the approximate EUP reciprocal).
    out_f32 = jax.block_until_ready(
        gp_attention_pallas(user_emb, item_emb, mask, index, params,
                            matmul_dtype=jnp.float32))
    assert out_f32.shape == (B, S, L, H)
    np.testing.assert_allclose(np.asarray(out_f32), np.asarray(ref), rtol=2e-3, atol=2e-3)

    # bf16 MXU path (v6e / v7x recommendation): bf16 matmul operands, f32 accumulation,
    # f32 softmax / LayerNorm.
    out_bf16 = jax.block_until_ready(
        gp_attention_pallas(user_emb, item_emb, mask, index, params,
                            matmul_dtype=jnp.bfloat16))
    assert out_bf16.shape == (B, S, L, H)
    np.testing.assert_allclose(np.asarray(out_bf16), np.asarray(ref), rtol=3e-2, atol=3e-2)

    print("KERNEL_OK")
</pallas_src>

<mosaic_0001>
module attributes {stable_mosaic.version = 11 : i64} {
  func.func @_gp_attention_kernel(%arg0: i32, %arg1: memref<2x32xf32, #tpu.memory_space<vmem>>, %arg2: memref<2x8x32xf32, #tpu.memory_space<vmem>>, %arg3: memref<32x32xf32, #tpu.memory_space<vmem>>, %arg4: memref<1x32xf32, #tpu.memory_space<vmem>>, %arg5: memref<32x64xf32, #tpu.memory_space<vmem>>, %arg6: memref<1x64xf32, #tpu.memory_space<vmem>>, %arg7: memref<32x32xf32, #tpu.memory_space<vmem>>, %arg8: memref<1x32xf32, #tpu.memory_space<vmem>>, %arg9: memref<1x32xf32, #tpu.memory_space<vmem>>, %arg10: memref<1x32xf32, #tpu.memory_space<vmem>>, %arg11: memref<8x8xf32, #tpu.memory_space<vmem>>, %arg12: memref<2x8x32xf32, #tpu.memory_space<vmem>>) attributes {dimension_semantics = [#tpu.dimension_semantics<parallel>], iteration_bounds = array<i64: 1>, scalar_prefetch = 0 : i64, scratch_operands = 0 : i64, tpu.core_type = #tpu.core_type<tc>, window_params = [{transform_indices = @transform_0, window_bounds = array<i64: 2, 32>}, {transform_indices = @transform_1, window_bounds = array<i64: 2, 8, 32>}, {pipeline_mode = #tpu.pipeline_mode<synchronous>, transform_indices = @transform_2, window_bounds = array<i64: 32, 32>}, {pipeline_mode = #tpu.pipeline_mode<synchronous>, transform_indices = @transform_3, window_bounds = array<i64: 1, 32>}, {pipeline_mode = #tpu.pipeline_mode<synchronous>, transform_indices = @transform_4, window_bounds = array<i64: 32, 64>}, {pipeline_mode = #tpu.pipeline_mode<synchronous>, transform_indices = @transform_5, window_bounds = array<i64: 1, 64>}, {pipeline_mode = #tpu.pipeline_mode<synchronous>, transform_indices = @transform_6, window_bounds = array<i64: 32, 32>}, {pipeline_mode = #tpu.pipeline_mode<synchronous>, transform_indices = @transform_7, window_bounds = array<i64: 1, 32>}, {pipeline_mode = #tpu.pipeline_mode<synchronous>, transform_indices = @transform_8, window_bounds = array<i64: 1, 32>}, {pipeline_mode = #tpu.pipeline_mode<synchronous>, transform_indices = @transform_9, window_bounds = array<i64: 1, 32>}, {pipeline_mode = #tpu.pipeline_mode<synchronous>, transform_indices = @transform_10, window_bounds = array<i64: 8, 8>}, {transform_indices = @transform_11, window_bounds = array<i64: 2, 8, 32>}]} {
    %c0 = arith.constant 0 : index
    %c0_0 = arith.constant 0 : index
    %c0_1 = arith.constant 0 : index
    %0 = vector.load %arg2[%c0, %c0_0, %c0_1] : memref<2x8x32xf32, #tpu.memory_space<vmem>>, vector<2x8x32xf32>
    %1 = vector.shape_cast %0 : vector<2x8x32xf32> to vector<16x32xf32>
    %c0_2 = arith.constant 0 : index
    %c0_3 = arith.constant 0 : index
    %2 = vector.load %arg5[%c0_2, %c0_3] : memref<32x64xf32, #tpu.memory_space<vmem>>, vector<32x64xf32>
    %cst = arith.constant dense<0.000000e+00> : vector<16x64xf32>
    %3 = tpu.matmul %1, %2, %cst {dimension_numbers = #tpu.dot_dimension_numbers<[1], [0], [0], [1], [0, 0, 1, 1], [], []>} : vector<16x32xf32>, vector<32x64xf32>, vector<16x64xf32> -> vector<16x64xf32>
    %c0_4 = arith.constant 0 : index
    %c0_5 = arith.constant 0 : index
    %4 = vector.load %arg6[%c0_4, %c0_5] : memref<1x64xf32, #tpu.memory_space<vmem>>, vector<1x64xf32>
    %5 = vector.broadcast %4 : vector<1x64xf32> to vector<16x64xf32>
    %6 = arith.addf %3, %5 : vector<16x64xf32>
    %7 = vector.extract_strided_slice %6 {offsets = [0, 0], sizes = [16, 32], strides = [1, 1]} : vector<16x64xf32> to vector<16x32xf32>
    %8 = vector.shape_cast %7 : vector<16x32xf32> to vector<2x8x32xf32>
    %9 = vector.extract_strided_slice %6 {offsets = [0, 32], sizes = [16, 32], strides = [1, 1]} : vector<16x64xf32> to vector<16x32xf32>
    %10 = vector.shape_cast %9 : vector<16x32xf32> to vector<2x8x32xf32>
    %c0_6 = arith.constant 0 : index
    %c0_7 = arith.constant 0 : index
    %11 = vector.load %arg1[%c0_6, %c0_7] : memref<2x32xf32, #tpu.memory_space<vmem>>, vector<2x32xf32>
    %c0_8 = arith.constant 0 : index
    %c0_9 = arith.constant 0 : index
    %12 = vector.load %arg3[%c0_8, %c0_9] : memref<32x32xf32, #tpu.memory_space<vmem>>, vector<32x32xf32>
    %cst_10 = arith.constant dense<0.000000e+00> : vector<2x32xf32>
    %13 = tpu.matmul %11, %12, %cst_10 {dimension_numbers = #tpu.dot_dimension_numbers<[1], [0], [0], [1], [0, 0, 1, 1], [], []>} : vector<2x32xf32>, vector<32x32xf32>, vector<2x32xf32> -> vector<2x32xf32>
    %c0_11 = arith.constant 0 : index
    %c0_12 = arith.constant 0 : index
    %14 = vector.load %arg4[%c0_11, %c0_12] : memref<1x32xf32, #tpu.memory_space<vmem>>, vector<1x32xf32>
    %15 = vector.broadcast %14 : vector<1x32xf32> to vector<2x32xf32>
    %16 = arith.addf %13, %15 : vector<2x32xf32>
    %17 = vector.shape_cast %16 : vector<2x32xf32> to vector<2x1x32xf32>
    %18 = vector.broadcast %17 : vector<2x1x32xf32> to vector<2x8x32xf32>
    %19 = arith.mulf %18, %8 : vector<2x8x32xf32>
    %cst_13 = arith.constant dense<0.000000e+00> : vector<2x8xf32>
    %20 = vector.multi_reduction <add>, %19, %cst_13 [2] : vector<2x8x32xf32> to vector<2x8xf32>
    %cst_14 = arith.constant dense<0xFF800000> : vector<2xf32>
    %21 = vector.multi_reduction <maximumf>, %20, %cst_14 [1] : vector<2x8xf32> to vector<2xf32>
    %22 = vector.shape_cast %21 : vector<2xf32> to vector<2x1xf32>
    %23 = vector.broadcast %22 : vector<2x1xf32> to vector<2x8xf32>
    %24 = arith.subf %20, %23 : vector<2x8xf32>
    %25 = math.exp %24 : vector<2x8xf32>
    %c0_15 = arith.constant 0 : index
    %c0_16 = arith.constant 0 : index
    %26 = vector.load %arg11[%c0_15, %c0_16] : memref<8x8xf32, #tpu.memory_space<vmem>>, vector<8x8xf32>
    %27 = vector.shape_cast %26 : vector<8x8xf32> to vector<1x8x8xf32>
    %28 = vector.shape_cast %25 : vector<2x8xf32> to vector<2x1x8xf32>
    %29 = vector.broadcast %27 : vector<1x8x8xf32> to vector<2x8x8xf32>
    %30 = vector.broadcast %28 : vector<2x1x8xf32> to vector<2x8x8xf32>
    %31 = arith.mulf %29, %30 : vector<2x8x8xf32>
    %cst_17 = arith.constant dense<0.000000e+00> : vector<2x8xf32>
    %32 = vector.multi_reduction <add>, %31, %cst_17 [2] : vector<2x8x8xf32> to vector<2x8xf32>
    %33 = vector.shape_cast %32 : vector<2x8xf32> to vector<2x8x1xf32>
    %34 = tpu.reciprocal %33 {approx = true} : vector<2x8x1xf32> -> vector<2x8x1xf32>
    %35 = vector.broadcast %34 : vector<2x8x1xf32> to vector<2x8x8xf32>
    %36 = arith.mulf %31, %35 : vector<2x8x8xf32>
    "tpu.trace_start"() <{level = 10 : i32, message = "btp,bph->bth"}> : () -> ()
    %cst_18 = arith.constant dense<0.000000e+00> : vector<2x8x32xf32>
    %37 = tpu.matmul %36, %10, %cst_18 {dimension_numbers = #tpu.dot_dimension_numbers<[2], [1], [1], [2], [0, 0, 0, 1, 1, 2], [0], [0]>} : vector<2x8x8xf32>, vector<2x8x32xf32>, vector<2x8x32xf32> -> vector<2x8x32xf32>
    "tpu.trace_stop"() : () -> ()
    %38 = vector.shape_cast %37 : vector<2x8x32xf32> to vector<16x32xf32>
    %c0_19 = arith.constant 0 : index
    %c0_20 = arith.constant 0 : index
    %39 = vector.load %arg7[%c0_19, %c0_20] : memref<32x32xf32, #tpu.memory_space<vmem>>, vector<32x32xf32>
    %cst_21 = arith.constant dense<0.000000e+00> : vector<16x32xf32>
    %40 = tpu.matmul %38, %39, %cst_21 {dimension_numbers = #tpu.dot_dimension_numbers<[1], [0], [0], [1], [0, 0, 1, 1], [], []>} : vector<16x32xf32>, vector<32x32xf32>, vector<16x32xf32> -> vector<16x32xf32>
    %c0_22 = arith.constant 0 : index
    %c0_23 = arith.constant 0 : index
    %41 = vector.load %arg8[%c0_22, %c0_23] : memref<1x32xf32, #tpu.memory_space<vmem>>, vector<1x32xf32>
    %42 = vector.broadcast %41 : vector<1x32xf32> to vector<16x32xf32>
    %43 = arith.addf %40, %42 : vector<16x32xf32>
    %44 = arith.addf %43, %1 : vector<16x32xf32>
    %cst_24 = arith.constant dense<0.000000e+00> : vector<16xf32>
    %45 = vector.multi_reduction <add>, %44, %cst_24 [1] : vector<16x32xf32> to vector<16xf32>
    %46 = vector.shape_cast %45 : vector<16xf32> to vector<16x1xf32>
    %cst_25 = arith.constant 3.200000e+01 : f32
    %47 = vector.broadcast %cst_25 : f32 to vector<16x1xf32>
    %48 = arith.divf %46, %47 : vector<16x1xf32>
    %49 = vector.broadcast %48 : vector<16x1xf32> to vector<16x32xf32>
    %50 = arith.subf %44, %49 : vector<16x32xf32>
    %51 = arith.mulf %50, %50 : vector<16x32xf32>
    %cst_26 = arith.constant dense<0.000000e+00> : vector<16xf32>
    %52 = vector.multi_reduction <add>, %51, %cst_26 [1] : vector<16x32xf32> to vector<16xf32>
    %53 = vector.shape_cast %52 : vector<16xf32> to vector<16x1xf32>
    %cst_27 = arith.constant 3.200000e+01 : f32
    %54 = vector.broadcast %cst_27 : f32 to vector<16x1xf32>
    %55 = arith.divf %53, %54 : vector<16x1xf32>
    %56 = vector.broadcast %48 : vector<16x1xf32> to vector<16x32xf32>
    %57 = arith.subf %44, %56 : vector<16x32xf32>
    %cst_28 = arith.constant 9.99999996E-13 : f32
    %58 = vector.broadcast %cst_28 : f32 to vector<16x1xf32>
    %59 = arith.addf %55, %58 : vector<16x1xf32>
    %60 = math.rsqrt %59 : vector<16x1xf32>
    %61 = vector.broadcast %60 : vector<16x1xf32> to vector<16x32xf32>
    %62 = arith.mulf %57, %61 : vector<16x32xf32>
    %c0_29 = arith.constant 0 : index
    %c0_30 = arith.constant 0 : index
    %63 = vector.load %arg9[%c0_29, %c0_30] : memref<1x32xf32, #tpu.memory_space<vmem>>, vector<1x32xf32>
    %64 = vector.broadcast %63 : vector<1x32xf32> to vector<16x32xf32>
    %65 = arith.mulf %62, %64 : vector<16x32xf32>
    %c0_31 = arith.constant 0 : index
    %c0_32 = arith.constant 0 : index
    %66 = vector.load %arg10[%c0_31, %c0_32] : memref<1x32xf32, #tpu.memory_space<vmem>>, vector<1x32xf32>
    %67 = vector.broadcast %66 : vector<1x32xf32> to vector<16x32xf32>
    %68 = arith.addf %65, %67 : vector<16x32xf32>
    %69 = vector.shape_cast %68 : vector<16x32xf32> to vector<2x8x32xf32>
    %c0_33 = arith.constant 0 : index
    %c0_34 = arith.constant 0 : index
    %c0_35 = arith.constant 0 : index
    %70 = vector.load %arg12[%c0_33, %c0_34, %c0_35] : memref<2x8x32xf32, #tpu.memory_space<vmem>>, vector<2x8x32xf32>
    tpu.vector_store %arg12[%c0_33, %c0_34, %c0_35], %69 {strides = array<i32>} : memref<2x8x32xf32, #tpu.memory_space<vmem>>, vector<2x8x32xf32>,
    return
  }
  func.func @transform_0(%arg0: i32) -> (i32, i32) {
    %c0_i32 = arith.constant 0 : i32
    %c0_i32_0 = arith.constant 0 : i32
    return %arg0, %c0_i32 : i32, i32
  }
  func.func @transform_1(%arg0: i32) -> (i32, i32, i32) {
    %c0_i32 = arith.constant 0 : i32
    %c0_i32_0 = arith.constant 0 : i32
    %c0_i32_1 = arith.constant 0 : i32
    return %arg0, %c0_i32, %c0_i32_0 : i32, i32, i32
  }
  func.func @transform_2(%arg0: i32) -> (i32, i32) {
    %c0_i32 = arith.constant 0 : i32
    %c0_i32_0 = arith.constant 0 : i32
    %c0_i32_1 = arith.constant 0 : i32
    return %c0_i32, %c0_i32_0 : i32, i32
  }
  func.func @transform_3(%arg0: i32) -> (i32, i32) {
    %c0_i32 = arith.constant 0 : i32
    %c0_i32_0 = arith.constant 0 : i32
    %c0_i32_1 = arith.constant 0 : i32
    return %c0_i32, %c0_i32_0 : i32, i32
  }
  func.func @transform_4(%arg0: i32) -> (i32, i32) {
    %c0_i32 = arith.constant 0 : i32
    %c0_i32_0 = arith.constant 0 : i32
    %c0_i32_1 = arith.constant 0 : i32
    return %c0_i32, %c0_i32_0 : i32, i32
  }
  func.func @transform_5(%arg0: i32) -> (i32, i32) {
    %c0_i32 = arith.constant 0 : i32
    %c0_i32_0 = arith.constant 0 : i32
    %c0_i32_1 = arith.constant 0 : i32
    return %c0_i32, %c0_i32_0 : i32, i32
  }
  func.func @transform_6(%arg0: i32) -> (i32, i32) {
    %c0_i32 = arith.constant 0 : i32
    %c0_i32_0 = arith.constant 0 : i32
    %c0_i32_1 = arith.constant 0 : i32
    return %c0_i32, %c0_i32_0 : i32, i32
  }
  func.func @transform_7(%arg0: i32) -> (i32, i32) {
    %c0_i32 = arith.constant 0 : i32
    %c0_i32_0 = arith.constant 0 : i32
    %c0_i32_1 = arith.constant 0 : i32
    return %c0_i32, %c0_i32_0 : i32, i32
  }
  func.func @transform_8(%arg0: i32) -> (i32, i32) {
    %c0_i32 = arith.constant 0 : i32
    %c0_i32_0 = arith.constant 0 : i32
    %c0_i32_1 = arith.constant 0 : i32
    return %c0_i32, %c0_i32_0 : i32, i32
  }
  func.func @transform_9(%arg0: i32) -> (i32, i32) {
    %c0_i32 = arith.constant 0 : i32
    %c0_i32_0 = arith.constant 0 : i32
    %c0_i32_1 = arith.constant 0 : i32
    return %c0_i32, %c0_i32_0 : i32, i32
  }
  func.func @transform_10(%arg0: i32) -> (i32, i32) {
    %c0_i32 = arith.constant 0 : i32
    %c0_i32_0 = arith.constant 0 : i32
    %c0_i32_1 = arith.constant 0 : i32
    return %c0_i32, %c0_i32_0 : i32, i32
  }
  func.func @transform_11(%arg0: i32) -> (i32, i32, i32) {
    %c0_i32 = arith.constant 0 : i32
    %c0_i32_0 = arith.constant 0 : i32
    %c0_i32_1 = arith.constant 0 : i32
    return %arg0, %c0_i32, %c0_i32_0 : i32, i32, i32
  }
}

</mosaic_0001>

<bundles_post_ra>
// kernel: tpu_custom_call.1
= control target key start
LH: loop header
LB: loop body
LE: loop exit
PB: predicated region body
PF: predicated region fallthrough
CT: control target
= control target key end

     0   :  { %16 = vsyncpa [#allocation3], 0  ;;  %s1204_s0 = inlined_call_operand.hbm [shape: f32[2,32], index: 0, kind: input, shape index: {}]   ;;  %s1205_s1 = inlined_call_operand.hbm [shape: f32[2,8,32], index: 1, kind: input, shape index: {}]   ;;  %s1206_s2 = inlined_call_operand.hbm [shape: f32[32,32], index: 2, kind: input, shape index: {}]   ;;  %s1207_s3 = inlined_call_operand.vmem [shape: f32[1,32], index: 3, kind: input, shape index: {}]   ;;  %s1208_s4 = inlined_call_operand.hbm [shape: f32[32,64], index: 4, kind: input, shape index: {}]   ;;  %s1209_s5 = inlined_call_operand.vmem [shape: f32[1,64], index: 5, kind: input, shape index: {}]   ;;  %s1210_s6 = inlined_call_operand.hbm [shape: f32[32,32], index: 6, kind: input, shape index: {}]   ;;  %s1211_s7 = inlined_call_operand.vmem [shape: f32[1,32], index: 7, kind: input, shape index: {}]   ;;  %s1212_s8 = inlined_call_operand.vmem [shape: f32[1,32], index: 8, kind: input, shape index: {}]   ;;  %s1213_s9 = inlined_call_operand.vmem [shape: f32[1,32], index: 9, kind: input, shape index: {}]   ;;  %s1214_s10 = inlined_call_operand.vmem [shape: f32[8,8], index: 10, kind: input, shape index: {}]   ;;  %s1215_s11 = inlined_call_operand.hbm [shape: f32[2,8,32], index: 11, kind: output, shape index: {}]  }
   0x1   :  { %17 = vsyncpa [#allocation6], 0 }
   0x2   :  { %18 = vsyncpa [#allocation9], 0 }
   0x3   :  { %19 = vsyncpa [#allocation4], 0  ;;  %s992_s17 = smov [#allocation5]   ;;  %s852_s21 = scalar_lea.hbm %s1205_s1, 256 }
   0x4   :  { %s35_s18 = sshll.u32 %s992_s17, 4  ;;  %p853_p0 = scmp.ne.s32.totalorder %s1205_s1, %s852_s21  ;;  %s36_s18 = int_to_ptr.vmem [resolvable:$true] %s35_s18 }
   0x5   :  { %p856_p1 = scmp.lt.u32.totalorder %s852_s21, %s1205_s1 }
   0x7   :  { %p858_p2 = pnand %p856_p1, %p853_p0 }
   0x9   :  { %861 = shalt.err (!%p858_p2)
}
   0xa   :  { %s862_s26 = scalar_lea.vmem %s36_s18, 256  ;;  %p867_p4 = scmp.lt.s32.totalorder %s36_s18, %s36_s18 }
   0xb   :  { %p863_p3 = scmp.ne.s32.totalorder %s36_s18, %s862_s26  ;;  %p868_p5 = scmp.lt.s32.totalorder %s862_s26, %s862_s26 }
   0xd   :  { %p869_p6 = por %p868_p5, %p867_p4 }
   0xf   :  { %p870_p7 = pnand %p869_p6, %p863_p3 }
  0x11   :  { %873 = shalt.err (!%p870_p7)
}
  0x12   :  { %s993_s27 = smov 128   ;;  %s994_s28 = smov 8  }
  0x13   :  { %41 = dma.hbm_to_vmem [thread:$0]  %s1205_s1, 256, %s36_s18, [#allocation6], %s993_s27, %s993_s27, %s994_s28  }
  0x14   :  { %s995_s12 = smov [#allocation8]   ;;  %s996_s14 = smov [#allocation2]  }
  0x15   :  { %s61_s13 = sshll.u32 %s995_s12, 4  ;;  %s26_s15 = sshll.u32 %s996_s14, 4  ;;  %s62_s13 = int_to_ptr.vmem [resolvable:$true] %s61_s13  ;;  %s27_s15 = int_to_ptr.vmem [resolvable:$true] %s26_s15 }
  0x16   :  { %s874_s19 = scalar_lea.hbm %s1208_s4, 512 }
  0x17   :  { %p875_p8 = scmp.ne.s32.totalorder %s1208_s4, %s874_s19  ;;  %p878_p9 = scmp.lt.u32.totalorder %s874_s19, %s1208_s4 }
  0x19   :  { %p880_p10 = pnand %p878_p9, %p875_p8 }
  0x1b   :  { %883 = shalt.err (!%p880_p10)
}
  0x1c   :  { %s884_s1 = scalar_lea.vmem %s62_s13, 512  ;;  %p889_p12 = scmp.lt.s32.totalorder %s62_s13, %s62_s13 }
  0x1d   :  { %p885_p11 = scmp.ne.s32.totalorder %s62_s13, %s884_s1  ;;  %p890_p13 = scmp.lt.s32.totalorder %s884_s1, %s884_s1 }
  0x1f   :  { %p891_p0 = por %p890_p13, %p889_p12 }
  0x21   :  { %p892_p1 = pnand %p891_p0, %p885_p11 }
  0x23   :  { %895 = shalt.err (!%p892_p1)
}
  0x24   :  { %67 = dma.hbm_to_vmem [thread:$0]  %s1208_s4, 512, %s62_s13, [#allocation9], %s993_s27, %s993_s27, %s994_s28  }
  0x25   :  { %s896_s29 = scalar_lea.hbm %s1204_s0, 32 }
  0x26   :  { %p897_p2 = scmp.ne.s32.totalorder %s1204_s0, %s896_s29  ;;  %p900_p3 = scmp.lt.u32.totalorder %s896_s29, %s1204_s0 }
  0x28   :  { %p902_p4 = pnand %p900_p3, %p897_p2 }
  0x2a   :  { %905 = shalt.err (!%p902_p4)
}
  0x2b   :  { %s906_s17 = scalar_lea.vmem %s27_s15, 32  ;;  %p911_p6 = scmp.lt.s32.totalorder %s27_s15, %s27_s15 }
  0x2c   :  { %p907_p5 = scmp.ne.s32.totalorder %s27_s15, %s906_s17  ;;  %p912_p7 = scmp.lt.s32.totalorder %s906_s17, %s906_s17 }
  0x2e   :  { %p913_p8 = por %p912_p7, %p911_p6 }
  0x30   :  { %p914_p9 = pnand %p913_p8, %p907_p5 }
  0x32   :  { %917 = shalt.err (!%p914_p9)
}
  0x33   :  { %29 = dma.hbm_to_vmem [thread:$0]  %s1204_s0, 32, %s27_s15, [#allocation3]  }
  0x34   :  { %s997_s19 = smov [#allocation7]   ;;  %s998_s21 = smov [#allocation10]  }
  0x35   :  { %s47_s20 = sshll.u32 %s997_s19, 4  ;;  %s75_s22 = sshll.u32 %s998_s21, 4  ;;  %s48_s20 = int_to_ptr.vmem [resolvable:$true] %s47_s20  ;;  %s76_s22 = int_to_ptr.vmem [resolvable:$true] %s75_s22 }
  0x36   :  { %s918_s18 = scalar_lea.hbm %s1206_s2, 512 }
  0x37   :  { %p919_p10 = scmp.ne.s32.totalorder %s1206_s2, %s918_s18  ;;  %p922_p11 = scmp.lt.u32.totalorder %s918_s18, %s1206_s2 }
  0x39   :  { %p924_p12 = pnand %p922_p11, %p919_p10 }
  0x3b   :  { %927 = shalt.err (!%p924_p12)
}
  0x3c   :  { %s928_s0 = scalar_lea.vmem %s48_s20, 512  ;;  %p933_p0 = scmp.lt.s32.totalorder %s48_s20, %s48_s20 }
  0x3d   :  { %p929_p13 = scmp.ne.s32.totalorder %s48_s20, %s928_s0  ;;  %p934_p1 = scmp.lt.s32.totalorder %s928_s0, %s928_s0 }
  0x3f   :  { %p935_p2 = por %p934_p1, %p933_p0 }
  0x41   :  { %p936_p3 = pnand %p935_p2, %p929_p13 }
  0x43   :  { %939 = shalt.err (!%p936_p3)
}
  0x44   :  { %53 = dma.hbm_to_vmem [thread:$0]  %s1206_s2, 512, %s48_s20, [#allocation6], %s993_s27, %s993_s27, %s994_s28  }
  0x45   :  { %s940_s16 = scalar_lea.hbm %s1210_s6, 512 }
  0x46   :  { %p941_p4 = scmp.ne.s32.totalorder %s1210_s6, %s940_s16  ;;  %p944_p5 = scmp.lt.u32.totalorder %s940_s16, %s1210_s6 }
  0x48   :  { %p946_p6 = pnand %p944_p5, %p941_p4 }
  0x4a   :  { %949 = shalt.err (!%p946_p6)
}
  0x4b   :  { %s950_s21 = scalar_lea.vmem %s76_s22, 512  ;;  %p955_p8 = scmp.lt.s32.totalorder %s76_s22, %s76_s22 }
  0x4c   :  { %p951_p7 = scmp.ne.s32.totalorder %s76_s22, %s950_s21  ;;  %p956_p9 = scmp.lt.s32.totalorder %s950_s21, %s950_s21 }
  0x4e   :  { %p957_p10 = por %p956_p9, %p955_p8 }
  0x50   :  { %p958_p11 = pnand %p957_p10, %p951_p7 }
  0x52   :  { %961 = shalt.err (!%p958_p11)
}
  0x53   :  { %81 = dma.hbm_to_vmem [thread:$0]  %s1210_s6, 512, %s76_s22, [#allocation9], %s993_s27, %s993_s27, %s994_s28  }
  0x54   :  { %984 = dma.done.wait [#allocation3], 32  }
  0x55   :  { %985 = vsyncadd [#allocation3], 4294967264 }
  0x56   :  { %986 = dma.done.wait [#allocation6], 768  }
  0x57   :  { %987 = vsyncadd [#allocation6], 4294966528 }
  0x58   :  { %988 = dma.done.wait [#allocation9], 1024  }
  0x59   :  { %989 = vsyncadd [#allocation9], 4294966272  ;;  %v999_v0 = vmov 0.0|0.0   ;;  %vm1000_vm0 = vmmov 0   ;;  %v1001_v1 = vmov 0.0   ;;  %v201_v2 = vld [vmem:[#allocation7] sm:$0xff]  ;;  %v289_v19 = vlaneseq }
  0x5a   :  { %810 = vmatprep.subr.bf16.mxu1 %v999_v0  ;;  %778 = vmatprep.mubr.msk.f32.mxu1 %vm1000_vm0, %v1001_v1  ;;  %v202_v3 = vld [vmem:[#allocation7 + $0x8] sm:$0xff]  ;;  %v107_v4 = vld [vmem:[#allocation8] sm:$0xff]  ;;  %v203_v7 = vld [vmem:[#allocation7 + $0x10] sm:$0xff]  ;;  %vm118_vm1 = vcmask 261120   ;;  %v1002_v17 = vmov 1966171168  }
  0x5b   :  { %v811_v5 = vpack.c.bf16 %v202_v3, %v201_v2  ;;  %v108_v6 = vld [vmem:[#allocation8 + $0x8] sm:$0xff]  ;;  %v204_v8 = vld [vmem:[#allocation7 + $0x18] sm:$0xff]  ;;  %v109_v10 = vld [vmem:[#allocation8 + $0x10] sm:$0xff]  ;;  %v287_v18 = vunpack.c.l.s4 %v1002_v17  ;;  %v290_v21 = vshrl.u32 %v289_v19, 7  ;;  %v329_v43 = vand.u32 127, %v289_v19  ;;  %s1004_s18 = smov 96  }
  0x5c   :  { %v802_v9 = vpack.c.bf16 %v108_v6, %v107_v4  ;;  %v110_v11 = vld [vmem:[#allocation8 + $0x18] sm:$0xff]  ;;  %v814_v12 = vpack.c.bf16 %v204_v8, %v203_v7  ;;  %v1140_v14 = vld [vmem:[#allocation5] sm:$0xff]  ;;  %v200_v15 = vld [vmem:[#allocation2] sm:$0x3]  ;;  %vm338_vm2 = vcmask 1041409   ;;  %vm341_vm3 = vcmask 58368  }
  0x5d   :  { %812 = vmatpush3.bf16.msra.mxu1 %v811_v5  ;;  %v806_v13 = vpack.c.bf16 %v110_v11, %v109_v10  ;;  %767 = vmatprep.mubr.msk.f32.mxu0 %vm118_vm1, %v1140_v14  ;;  %v1145_v16 = vld [vmem:[#allocation5 + $0x8] sm:$0xff]  ;;  %v288_v20 = vunpack.c.0.s8 %v287_v18  ;;  %v729_v22 = vld [vmem:[%s1207_s3] ss:$0 sm:$0xff]  ;;  %v310_v31 = vsub.s32 0, %v290_v21  ;;  %v332_v45 = vsub.s32 %v329_v43, %v290_v21  ;;  %s1005_s0 = smov [#allocation11]  }
  0x5e   :  { %803 = vmatprep.subr.bf16.mxu0 %v802_v9  ;;  %813 = vmatprep.subr.bf16.mxu1 %v999_v0  ;;  %v726_v28 = vld [vmem:[%s1209_s5] ss:$0 sm:$0xff]  ;;  %v1003_v51 = vmov 0   ;;  %v352_v52 = vsub.s32 1, %v290_v21  ;;  %vm401_vm4 = vcmask 64512   ;;  %s712_s15 = sshll.u32 %s1005_s0, 4  ;;  %s713_s15 = int_to_ptr.vmem [resolvable:$true] %s712_s15 }
  0x5f   :  { %805 = vmatpush3.bf16.msra.mxu0 %v802_v9  ;;  %v291_v23 = vsub.s32 %v288_v20, %v290_v21  ;;  %839 = vset.pattern.permute.xlu0 %v1003_v51  ;;  %v362_v63 = vld [vmem:[%s1214_s10] sm:$0xff]  ;;  %v568_v21 = vld [vmem:[#allocation10 + $0x10] sm:$0xff]  ;;  %s962_s30 = scalar_lea.vmem %s713_s15, 256  ;;  %p967_p13 = scmp.lt.s32.totalorder %s713_s15, %s713_s15 }
  0x60   :  { %807 = vmatprep.subr.bf16.mxu0 %v806_v13  ;;  %838 = vset.pattern.permute.xlu1 %v1003_v51  ;;  %v566_v8 = vld [vmem:[#allocation10] sm:$0xff]  ;;  %v567_v9 = vld [vmem:[#allocation10 + $0x8] sm:$0xff]  ;;  %p963_p12 = scmp.ne.s32.totalorder %s713_s15, %s962_s30  ;;  %p968_p0 = scmp.lt.s32.totalorder %s962_s30, %s962_s30 }
  0x61   :  { %815 = vmatpush3.bf16.msra.mxu1 %v814_v12  ;;  %v816_v10 = vpack.c.bf16 %v567_v9, %v566_v8  ;;  %v736_v51 = vld [vmem:[%s1212_s8] ss:$0 sm:$0xff] }
  0x62   :  { %781 = vmatprep.subr.mxu1 %v1001_v1  ;;  %p969_p1 = por %p968_p0, %p967_p13 }
  0x63   :  { %809 = vmatpush3.bf16.msra.mxu0 %v806_v13 }
  0x64   :  { %779 = vmatmul.mubr.msk.f32.vlgmr.msra.gmra.mrb[0].mxu1 %vm118_vm1, %v200_v15  ;;  %817 = vmatprep.subr.bf16.mxu0 %v816_v10  ;;  %p970_p2 = pnand %p969_p1, %p963_p12 }
  0x65   :  { %783 = vmatprep.mubr.msk.f32.mxu1 %vm1000_vm0, %v1001_v1 }
  0x66   :  { %768 = vmatmul.mubr.msk.f32.vlgmr.msra.gmra.mrb[0].mxu0 %vm118_vm1, %v1145_v16 }
  0x67   :  { %819 = vmatpush3.bf16.msra.mxu0 %v816_v10 }
 0x137   :  { %v281_v24 = vpop.f32.mrb[0].mxu1 }
 0x138   :  { %v282_v25 = vadd.f32 %v729_v22, %v281_v24  ;;  %v780_v26 = vpop.f32.mrb[1].mxu1  ;;  %v569_v22 = vld [vmem:[#allocation10 + $0x18] sm:$0xff] }
 0x139   :  { %v769_v27 = vpop.f32.mrb[0].mxu0 }
 0x13a   :  { %v292_v29 = vrot.slane %v282_v25, %v291_v23  ;;  %v191_v30 = vpop.f32.mrb[1].mxu0  ;;  %v197_v37 = vadd.f32 %v769_v27, %v726_v28 }
 0x13b   :  { %v192_v34 = vadd.f32 %v726_v28, %v191_v30 }
 0x13c   :  { %v293_v32 = vcombine.high %v292_v29, %v292_v29  ;;  %v300_v33 = vrot.slane %v292_v29, %v291_v23 }
 0x13e   :  { %v311_v35 = vrot.slane %v300_v33, %v310_v31  ;;  %v307_v36 = vrot.slane %v293_v32, %v291_v23  ;;  %v820_v23 = vpack.c.bf16 %v569_v22, %v568_v21 }
 0x140   :  { %v318_v38 = vmul.f32 %v311_v35, %v192_v34  ;;  %v315_v39 = vrot.slane %v307_v36, %v310_v31  ;;  %821 = vmatprep.subr.bf16.mxu0 %v820_v23 }
 0x141   :  { %823 = vmatpush3.bf16.msra.mxu0 %v820_v23 }
 0x142   :  { %v320_v40 = vsel %vm118_vm1, %v318_v38, 0.0  ;;  %v319_v41 = vmul.f32 %v315_v39, %v197_v37 }
 0x143   :  { %321 = vadd.xlane.f32.xlu0 %v320_v40 }
 0x144   :  { %v323_v42 = vsel %vm118_vm1, %v319_v41, 0.0 }
 0x147   :  { %324 = vadd.xlane.f32.xlu0 %v323_v42 }
 0x1d0   :  { %v322_v44 = vpop.xlane.xlu0 %321 }
 0x1d1   :  { %v333_v47 = vrot.slane %v322_v44, %v332_v45 }
 0x1d4   :  { %v325_v46 = vpop.xlane.xlu0 %324 }
 0x1d5   :  { %v337_v48 = vrot.slane %v325_v46, %v332_v45 }
 0x1d7   :  { %v339_v49 = vsel %vm338_vm2, %v337_v48, %v333_v47 }
 0x1d8   :  { %v342_v50 = vsel %vm341_vm3, %v339_v49, -inf }
 0x1d9   :  { %343 = vmax.xlane.f32.xlu1 %v342_v50 }
 0x266   :  { %v344_v53 = vpop.xlane.xlu1 %343 }
 0x267   :  { %v349_v54 = vrot.slane %v344_v53, %v310_v31  ;;  %v353_v55 = vrot.slane %v344_v53, %v352_v52  ;;  %v737_v53 = vld [vmem:[%s1213_s9] ss:$0 sm:$0xff] }
 0x269   :  { %v356_v56 = vsub.f32 %v322_v44, %v349_v54  ;;  %v357_v57 = vsub.f32 %v325_v46, %v353_v55 }
 0x26b   :  { %v358_v58 = vmul.f32 1.442695, %v356_v56  ;;  %v360_v59 = vmul.f32 1.442695, %v357_v57 }
 0x26d   :  { %840 = vpow2.f32 %v358_v58 }
 0x26e   :  { %842 = vpow2.f32 %v360_v59 }
 0x277   :  { %v841_v60 = vpop.eup %840 }
 0x278   :  { %v843_v61 = vpop.eup %842  ;;  %366 = vperm.xlu1 %838, %v841_v60  }
 0x279   :  { %369 = vperm.xlu0 %839, %v843_v61  }
 0x2f7   :  { %v367_v62 = vpop.permute.xlu1 %366 }
 0x2f8   :  { %v370_v0 = vpop.permute.xlu0 %369  ;;  %v374_v2 = vrot.slane %v367_v62, %v332_v45 }
 0x2f9   :  { %v378_v3 = vrot.slane %v370_v0, %v332_v45 }
 0x2fa   :  { %v399_v4 = vmul.f32 %v374_v2, %v362_v63 }
 0x2fb   :  { %v400_v5 = vmul.f32 %v378_v3, %v362_v63 }
 0x2fc   :  { %v402_v6 = vsel %vm401_vm4, %v399_v4, 0.0 }
 0x2fd   :  { %v405_v7 = vsel %vm401_vm4, %v400_v5, 0.0  ;;  %403 = vadd.xlane.f32.xlu1 %v402_v6 }
 0x2fe   :  { %406 = vadd.xlane.f32.xlu0 %v405_v7 }
 0x30e   :  { %413 = vrot.lane.b32.xlu1 %v192_v34, %s1004_s18 }
 0x312   :  { %490 = vrot.lane.b32.xlu1 %v197_v37, %s1004_s18 }
 0x38a   :  { %v404_v11 = vpop.xlane.xlu1 %403 }
 0x38b   :  { %v407_v12 = vpop.xlane.xlu0 %406  ;;  %844 = vrcp.f32 %v404_v11 }
 0x38c   :  { %846 = vrcp.f32 %v407_v12 }
 0x38e   :  { %v414_v13 = vpop.permute.xlu1 %413 }
 0x38f   :  { %782 = vmatpush3.msra.mxu1 %v414_v13 }
 0x390   :  { %786 = vmatprep.subr.mxu1 %v1001_v1 }
 0x392   :  { %v491_v19 = vpop.permute.xlu1 %490 }
 0x395   :  { %v845_v15 = vpop.eup %844 }
 0x396   :  { %v410_v17 = vmul.f32 %v845_v15, %v399_v4  ;;  %v847_v18 = vpop.eup %846 }
 0x397   :  { %v411_v20 = vmul.f32 %v847_v18, %v400_v5 }
 0x398   :  { %784 = vmatmul.mubr.msk.f32.vlgmr.msra.gmra.mrb[2].mxu1 %vm401_vm4, %v410_v17 }
 0x399   :  { %787 = vmatpush3.msra.mxu1 %v491_v19  ;;  %788 = vmatprep.mubr.msk.f32.mxu1 %vm1000_vm0, %v1001_v1  ;;  %v733_v1 = vld [vmem:[%s1211_s7] ss:$0 sm:$0xff] }
 0x39c   :  { %789 = vmatmul.mubr.msk.f32.vlgmr.msra.gmra.mrb[4].mxu1 %vm401_vm4, %v411_v20 }
 0x46b   :  { %v485_v24 = vpop.f32.mrb[2].mxu1 }
 0x46c   :  { %v785_v25 = vpop.f32.mrb[3].mxu1  ;;  %799 = vmatprep.mubr.msk.f32.mxu0 %vm118_vm1, %v485_v24 }
 0x46f   :  { %v562_v26 = vpop.f32.mrb[4].mxu1 }
 0x470   :  { %v790_v27 = vpop.f32.mrb[5].mxu1  ;;  %800 = vmatmul.mubr.msk.f32.vlgmr.msra.gmra.mrb[2].mxu0 %vm118_vm1, %v562_v26 }
 0x543   :  { %v801_v28 = vpop.f32.mrb[2].mxu0 }
 0x544   :  { %v655_v29 = vadd.f32 %v801_v28, %v733_v1  ;;  %v649_v30 = vpop.f32.mrb[3].mxu0 }
 0x545   :  { %v650_v31 = vadd.f32 %v733_v1, %v649_v30 }
 0x546   :  { %v659_v32 = vadd.f32 %v655_v29, %v1145_v16 }
 0x547   :  { %v658_v33 = vadd.f32 %v650_v31, %v1140_v14 }
 0x548   :  { %v663_v34 = vsel %vm118_vm1, %v659_v32, 0.0 }
 0x549   :  { %664 = vadd.xlane.f32.xlu0 %v663_v34  ;;  %v660_v35 = vsel %vm118_vm1, %v658_v33, 0.0 }
 0x54a   :  { %661 = vadd.xlane.f32.xlu1 %v660_v35 }
 0x5d6   :  { %v665_v36 = vpop.xlane.xlu0 %664 }
 0x5d7   :  { %v668_v37 = vmul.f32 0.03125, %v665_v36  ;;  %v662_v38 = vpop.xlane.xlu1 %661 }
 0x5d8   :  { %v667_v39 = vmul.f32 0.03125, %v662_v38 }
 0x5d9   :  { %v670_v40 = vsub.f32 %v659_v32, %v668_v37 }
 0x5da   :  { %v669_v41 = vsub.f32 %v658_v33, %v667_v39 }
 0x5db   :  { %v672_v44 = vmul.f32 %v670_v40, %v670_v40 }
 0x5dc   :  { %v671_v42 = vmul.f32 %v669_v41, %v669_v41 }
 0x5dd   :  { %v676_v16 = vsel %vm118_vm1, %v672_v44, 0.0 }
 0x5de   :  { %v673_v43 = vsel %vm118_vm1, %v671_v42, 0.0 }
 0x5df   :  { %674 = vadd.xlane.f32.xlu0 %v673_v43 }
 0x5e3   :  { %677 = vadd.xlane.f32.xlu0 %v676_v16 }
 0x66c   :  { %v675_v14 = vpop.xlane.xlu0 %674 }
 0x66d   :  { %v679_v45 = vmul.f32 0.03125, %v675_v14 }
 0x66f   :  { %v681_v46 = vadd.f32 1e-12, %v679_v45 }
 0x670   :  { %v678_v47 = vpop.xlane.xlu0 %677 }
 0x671   :  { %848 = vrsqrt.f32 %v681_v46  ;;  %v680_v48 = vmul.f32 0.03125, %v678_v47 }
 0x673   :  { %v682_v49 = vadd.f32 1e-12, %v680_v48 }
 0x675   :  { %850 = vrsqrt.f32 %v682_v49 }
 0x67b   :  { %v849_v50 = vpop.eup %848 }
 0x67c   :  { %v685_v52 = vmul.f32 %v849_v50, %v669_v41 }
 0x67e   :  { %v694_v54 = vmul.f32 %v736_v51, %v685_v52 }
 0x67f   :  { %v851_v55 = vpop.eup %850 }
 0x680   :  { %v686_v56 = vmul.f32 %v851_v55, %v670_v40  ;;  %v703_v57 = vadd.f32 %v737_v53, %v694_v54 }
 0x682   :  { %v695_v58 = vmul.f32 %v736_v51, %v686_v56  ;;  %705 = vst.msk [vmem:[#allocation11] sm:$0xff] %vm118_vm1, %v703_v57 }
 0x684   :  { %v704_v59 = vadd.f32 %v737_v53, %v695_v58 }
 0x686   :  { %706 = vst.msk [vmem:[#allocation11 + $0x8] sm:$0xff] %vm118_vm1, %v704_v59 }
 0x687   :  { %973 = shalt.err (!%p970_p2)
}
 0x688   :  { %s974_s12 = scalar_lea.hbm %s1215_s11, 256 }
 0x689   :  { %p975_p3 = scmp.ne.s32.totalorder %s1215_s11, %s974_s12  ;;  %p978_p4 = scmp.lt.u32.totalorder %s974_s12, %s1215_s11 }
 0x68b   :  { %p980_p5 = pnand %p978_p4, %p975_p3 }
 0x68d   :  { %983 = shalt.err (!%p980_p5)
}
 0x68e   :  { %718 = dma.vmem_to_hbm [thread:$0]  %s713_s15, 256, %s1215_s11, [#allocation4], %s993_s27, %s993_s27, %s994_s28  }
 0x68f   :  { %990 = dma.done.wait [#allocation4], 256  }
 0x690   :  { %991 = vsyncadd [#allocation4], 4294967040 }
 0x691   :  { %722 = vsyncpa [#allocation3], 1 }
 0x692   :  { %723 = vsyncpa [#allocation6], 1 }
 0x693   :  { %724 = vsyncpa [#allocation9], 1 }
 0x694   :  { %725 = vsyncpa [#allocation4], 1 }

</bundles_post_ra>
